<compile_context>
chip_gen: v7x
topology: tpu7x:2x2x1
jax: 0.10.0
libtpu: 0.0.40
codegen_flags: <defaults>
</compile_context>

<pallas_src>
import functools

import jax
import jax.numpy as jnp
from jax import lax
from jax.experimental import pallas as pl
from jax.experimental.pallas import tpu as pltpu


def _round_up(x: int, m: int) -> int:
    return ((x + m - 1) // m) * m


def _cdiv(a: int, b: int) -> int:
    return (a + b - 1) // b


def _vmem_capacity_bytes() -> int:
    try:
        return int(pltpu.get_tpu_info().vmem_capacity_bytes)
    except Exception:
        return 64 * 1024 * 1024  # conservative default (v7x per-TC VMEM)


def _make_fold_kernel(n_experts, normalize, precision):
    """Inputs pre-flattened to (block_b, T*D); temporal mean folded into matmul K dim."""

    def kernel(*refs):
        im_refs = refs[:n_experts]
        w_refs = refs[n_experts:2 * n_experts]
        b_ref = refs[2 * n_experts]
        out_ref = refs[2 * n_experts + 1]

        feats = jnp.dot(im_refs[0][...], w_refs[0][...],
                        preferred_element_type=jnp.float32, precision=precision)
        for e in range(1, n_experts):
            feats = feats + jnp.dot(im_refs[e][...], w_refs[e][...],
                                    preferred_element_type=jnp.float32, precision=precision)
        feats = feats + b_ref[...]
        if normalize:
            sumsq = jnp.sum(feats * feats, axis=-1, keepdims=True)
            feats = feats * lax.rsqrt(jnp.maximum(sumsq, 1e-24))  # == 1 / max(||f||, 1e-12)
        out_ref[...] = feats.astype(out_ref.dtype)

    return kernel


def _make_reduce_kernel(n_experts, normalize, precision):
    """Fallback: (block_b, T, D) blocks, one sublane (XLU) sum over T, then matmul (1/T in w)."""

    def kernel(*refs):
        im_refs = refs[:n_experts]
        w_refs = refs[n_experts:2 * n_experts]
        b_ref = refs[2 * n_experts]
        out_ref = refs[2 * n_experts + 1]

        feats = None
        for e in range(n_experts):
            pooled = jnp.sum(im_refs[e][...], axis=1)  # sublane reduce, native dtype
            d = jnp.dot(pooled, w_refs[e][...],
                        preferred_element_type=jnp.float32, precision=precision)
            feats = d if feats is None else feats + d
        feats = feats + b_ref[...]
        if normalize:
            sumsq = jnp.sum(feats * feats, axis=-1, keepdims=True)
            feats = feats * lax.rsqrt(jnp.maximum(sumsq, 1e-24))
        out_ref[...] = feats.astype(out_ref.dtype)

    return kernel


@functools.partial(jax.jit, static_argnames=("normalize", "block_b"))
def image_encoder(images, w_t, b, *, normalize=True, block_b=None):
    """Pallas ImageEncoder forward.

    images: tuple of expert tensors, each (B, T_e, D_e), all the same floating dtype
    w_t:    (sum(D_e), sem_dim)  -- nn.Linear weight, pre-transposed (W.T)
    b:      (sem_dim,) or (1, sem_dim)
    returns (B, sem_dim) in the input dtype
    """
    images = tuple(images)
    n = len(images)
    assert n >= 1
    B = images[0].shape[0]
    Ts = [im.shape[1] for im in images]
    Ds = [im.shape[2] for im in images]
    for im in images:
        assert im.ndim == 3 and im.shape[0] == B
        assert im.dtype == images[0].dtype, "all experts must share a dtype"
    in_dim, sem_dim = w_t.shape
    assert in_dim == sum(Ds)

    cdt = images[0].dtype                       # stream activations in their native dtype
    itemsize = jnp.dtype(cdt).itemsize
    # f32 inputs: keep true-f32 Linear semantics on the MXU; bf16 inputs: native single pass.
    precision = lax.Precision.HIGHEST if cdt == jnp.float32 else None

    Sp = _round_up(sem_dim, 128)                # lane-dense weight columns / output stores

    # --- tiny parameter preprocessing (weights/bias only; activations never copied) ---
    offs = [0]
    for d in Ds:
        offs.append(offs[-1] + d)
    w_cols = [w_t[offs[e]:offs[e + 1], :].astype(jnp.float32) * (1.0 / Ts[e])  # fold 1/T
              for e in range(n)]
    bias = jnp.pad(jnp.reshape(b, (1, sem_dim)).astype(jnp.float32),
                   ((0, 0), (0, Sp - sem_dim)))

    # --- VMEM budget (per chip generation) & kernel-variant selection ---
    vmem_cap = _vmem_capacity_bytes()                       # 64 MiB v7x / 128 MiB v5e,v6e
    vmem_limit = min(int(vmem_cap * 0.75), 100 * 1024 * 1024)
    budget = int(vmem_limit * 0.85)                         # headroom for compiler scratch

    fold_w_bytes = sum(Ts[e] * Ds[e] for e in range(n)) * Sp * itemsize
    use_fold = fold_w_bytes <= budget // 3                  # leave room for streamed inputs

    if use_fold:
        # Replicate each expert's weight rows T times so pooling rides the MXU K dimension.
        w_ops = [jnp.pad(jnp.tile(w_cols[e], (Ts[e], 1)),
                         ((0, 0), (0, Sp - sem_dim))).astype(cdt) for e in range(n)]
        im_ops = [jnp.reshape(images[e], (B, Ts[e] * Ds[e])) for e in range(n)]  # free reshape
        resident_bytes = fold_w_bytes + Sp * 4
    else:
        w_ops = [jnp.pad(w_cols[e], ((0, 0), (0, Sp - sem_dim))).astype(cdt) for e in range(n)]
        im_ops = list(images)
        resident_bytes = sum(Ds) * Sp * itemsize + Sp * 4

    # --- VMEM-aware batch tile ---
    if block_b is None:
        per_row_in = sum(Ts[e] * Ds[e] for e in range(n)) * itemsize   # double-buffered
        per_row_out = Sp * itemsize                                    # double-buffered
        avail = max(budget - resident_bytes, 1)
        bb = avail // (2 * per_row_in + 2 * per_row_out)
        bb = max(8, (bb // 8) * 8)
        bb = min(bb, 1024, _round_up(B, 8))
        # >=2 grid steps when B allows: "parallel" then shards the batch across v7x's two
        # TensorCores (harmless on single-TC v5e/v6e).
        bb = min(bb, max(8, _round_up(_cdiv(B, 2), 8)))
        if B <= bb:
            bb = B                    # single full tile (block dim == full array dim is legal)
        block_b = bb

    grid = (_cdiv(B, block_b),)

    # Resident blocks (constant index_map): single VMEM buffer, fetched once.
    resident_mode = pl.Buffered(1)
    if use_fold:
        in_specs = [pl.BlockSpec((block_b, Ts[e] * Ds[e]), lambda i: (i, 0)) for e in range(n)]
        w_specs = [pl.BlockSpec((Ts[e] * Ds[e], Sp), lambda i: (0, 0),
                                pipeline_mode=resident_mode) for e in range(n)]
        kernel = _make_fold_kernel(n, normalize, precision)
    else:
        in_specs = [pl.BlockSpec((block_b, Ts[e], Ds[e]), lambda i: (i, 0, 0)) for e in range(n)]
        w_specs = [pl.BlockSpec((Ds[e], Sp), lambda i: (0, 0),
                                pipeline_mode=resident_mode) for e in range(n)]
        kernel = _make_reduce_kernel(n, normalize, precision)
    b_spec = pl.BlockSpec((1, Sp), lambda i: (0, 0), pipeline_mode=resident_mode)

    out = pl.pallas_call(
        kernel,
        out_shape=jax.ShapeDtypeStruct((B, Sp), cdt),
        grid_spec=pltpu.PrefetchScalarGridSpec(
            num_scalar_prefetch=0,
            grid=grid,
            in_specs=in_specs + w_specs + [b_spec],
            out_specs=pl.BlockSpec((block_b, Sp), lambda i: (i, 0)),
        ),
        compiler_params=pltpu.CompilerParams(
            dimension_semantics=("parallel",),   # batch tiles shard across TCs on v7x
            vmem_limit_bytes=vmem_limit,         # ~48 MiB on v7x, ~96 MiB on v5e/v6e
        ),
    )(*im_ops, *w_ops, bias)

    # Strip the (zero-contribution) sem_dim padding outside the kernel.
    return out[:, :sem_dim]


def image_encoder_ref(images, w_t, b, normalize=True):
    """Pure-JAX reference (true-f32 matmul so the comparison is against exact Linear math)."""
    x = jnp.concatenate([jnp.mean(im.astype(jnp.float32), axis=1) for im in images], axis=-1)
    feats = jnp.dot(x, w_t.astype(jnp.float32), precision=lax.Precision.HIGHEST)
    feats = feats + jnp.reshape(b, (1, -1)).astype(jnp.float32)
    if normalize:
        norm = jnp.sqrt(jnp.sum(feats * feats, axis=-1, keepdims=True))
        feats = feats / jnp.maximum(norm, 1e-12)
    return feats


if __name__ == "__main__":
    # Small synthetic config: two "experts" with dims 16 and 16 -> in_dim=32, sem_dim=32.
    B, T = 2, 8
    D1, D2 = 16, 16
    in_dim = D1 + D2
    sem_dim = 32

    key = jax.random.PRNGKey(0)
    k1, k2, kw, kb = jax.random.split(key, 4)

    im1 = jax.random.normal(k1, (B, T, D1), dtype=jnp.float32)
    im2 = jax.random.normal(k2, (B, T, D2), dtype=jnp.float32)

    # Deterministic synthetic nn.Linear params (PyTorch stores W as (sem_dim, in_dim);
    # we pass its transpose so the kernel computes x @ W^T + b).
    bound = 1.0 / (in_dim ** 0.5)
    w = jax.random.uniform(kw, (sem_dim, in_dim), minval=-bound, maxval=bound, dtype=jnp.float32)
    b = jax.random.uniform(kb, (1, sem_dim), minval=-bound, maxval=bound, dtype=jnp.float32)
    w_t = w.T  # (in_dim, sem_dim)

    out = image_encoder((im1, im2), w_t, b, normalize=True)
    out = jax.block_until_ready(out)

    ref = image_encoder_ref((im1, im2), w_t, b, normalize=True)
    assert out.shape == (B, sem_dim)
    assert jnp.allclose(out, ref, atol=1e-5, rtol=1e-5), "mismatch vs pure-JAX reference"

    print("KERNEL_OK")
</pallas_src>

<mosaic_0001>
module attributes {stable_mosaic.version = 11 : i64} {
  func.func @kernel(%arg0: i32, %arg1: memref<2x128xf32, #tpu.memory_space<vmem>>, %arg2: memref<2x128xf32, #tpu.memory_space<vmem>>, %arg3: memref<128x128xf32, #tpu.memory_space<vmem>>, %arg4: memref<128x128xf32, #tpu.memory_space<vmem>>, %arg5: memref<1x128xf32, #tpu.memory_space<vmem>>, %arg6: memref<2x128xf32, #tpu.memory_space<vmem>>) attributes {dimension_semantics = [#tpu.dimension_semantics<parallel>], iteration_bounds = array<i64: 1>, scalar_prefetch = 0 : i64, scratch_operands = 0 : i64, tpu.core_type = #tpu.core_type<tc>, window_params = [{transform_indices = @transform_0, window_bounds = array<i64: 2, 128>}, {transform_indices = @transform_1, window_bounds = array<i64: 2, 128>}, {pipeline_mode = #tpu.pipeline_mode<synchronous>, transform_indices = @transform_2, window_bounds = array<i64: 128, 128>}, {pipeline_mode = #tpu.pipeline_mode<synchronous>, transform_indices = @transform_3, window_bounds = array<i64: 128, 128>}, {pipeline_mode = #tpu.pipeline_mode<synchronous>, transform_indices = @transform_4, window_bounds = array<i64: 1, 128>}, {transform_indices = @transform_5, window_bounds = array<i64: 2, 128>}]} {
    %c0 = arith.constant 0 : index
    %c0_0 = arith.constant 0 : index
    %0 = vector.load %arg1[%c0, %c0_0] : memref<2x128xf32, #tpu.memory_space<vmem>>, vector<2x128xf32>
    %c0_1 = arith.constant 0 : index
    %c0_2 = arith.constant 0 : index
    %1 = vector.load %arg3[%c0_1, %c0_2] : memref<128x128xf32, #tpu.memory_space<vmem>>, vector<128x128xf32>
    %cst = arith.constant dense<0.000000e+00> : vector<2x128xf32>
    %2 = tpu.matmul %0, %1, %cst {dimension_numbers = #tpu.dot_dimension_numbers<[1], [0], [0], [1], [0, 0, 1, 1], [], []>, precision = #tpu.contract_precision<fp32>} : vector<2x128xf32>, vector<128x128xf32>, vector<2x128xf32> -> vector<2x128xf32>
    %c0_3 = arith.constant 0 : index
    %c0_4 = arith.constant 0 : index
    %3 = vector.load %arg2[%c0_3, %c0_4] : memref<2x128xf32, #tpu.memory_space<vmem>>, vector<2x128xf32>
    %c0_5 = arith.constant 0 : index
    %c0_6 = arith.constant 0 : index
    %4 = vector.load %arg4[%c0_5, %c0_6] : memref<128x128xf32, #tpu.memory_space<vmem>>, vector<128x128xf32>
    %cst_7 = arith.constant dense<0.000000e+00> : vector<2x128xf32>
    %5 = tpu.matmul %3, %4, %cst_7 {dimension_numbers = #tpu.dot_dimension_numbers<[1], [0], [0], [1], [0, 0, 1, 1], [], []>, precision = #tpu.contract_precision<fp32>} : vector<2x128xf32>, vector<128x128xf32>, vector<2x128xf32> -> vector<2x128xf32>
    %6 = arith.addf %2, %5 : vector<2x128xf32>
    %c0_8 = arith.constant 0 : index
    %c0_9 = arith.constant 0 : index
    %7 = vector.load %arg5[%c0_8, %c0_9] : memref<1x128xf32, #tpu.memory_space<vmem>>, vector<1x128xf32>
    %8 = vector.broadcast %7 : vector<1x128xf32> to vector<2x128xf32>
    %9 = arith.addf %6, %8 : vector<2x128xf32>
    %10 = arith.mulf %9, %9 : vector<2x128xf32>
    %cst_10 = arith.constant dense<0.000000e+00> : vector<2xf32>
    %11 = vector.multi_reduction <add>, %10, %cst_10 [1] : vector<2x128xf32> to vector<2xf32>
    %12 = vector.shape_cast %11 : vector<2xf32> to vector<2x1xf32>
    %cst_11 = arith.constant 1.000000e-24 : f32
    %13 = vector.broadcast %cst_11 : f32 to vector<2x1xf32>
    %14 = arith.maximumf %12, %13 : vector<2x1xf32>
    %15 = math.rsqrt %14 : vector<2x1xf32>
    %16 = vector.broadcast %15 : vector<2x1xf32> to vector<2x128xf32>
    %17 = arith.mulf %9, %16 : vector<2x128xf32>
    %c0_12 = arith.constant 0 : index
    %c0_13 = arith.constant 0 : index
    %18 = vector.load %arg6[%c0_12, %c0_13] : memref<2x128xf32, #tpu.memory_space<vmem>>, vector<2x128xf32>
    tpu.vector_store %arg6[%c0_12, %c0_13], %17 {strides = array<i32>} : memref<2x128xf32, #tpu.memory_space<vmem>>, vector<2x128xf32>,
    return
  }
  func.func @transform_0(%arg0: i32) -> (i32, i32) {
    %c0_i32 = arith.constant 0 : i32
    %c0_i32_0 = arith.constant 0 : i32
    return %arg0, %c0_i32 : i32, i32
  }
  func.func @transform_1(%arg0: i32) -> (i32, i32) {
    %c0_i32 = arith.constant 0 : i32
    %c0_i32_0 = arith.constant 0 : i32
    return %arg0, %c0_i32 : i32, i32
  }
  func.func @transform_2(%arg0: i32) -> (i32, i32) {
    %c0_i32 = arith.constant 0 : i32
    %c0_i32_0 = arith.constant 0 : i32
    %c0_i32_1 = arith.constant 0 : i32
    return %c0_i32, %c0_i32_0 : i32, i32
  }
  func.func @transform_3(%arg0: i32) -> (i32, i32) {
    %c0_i32 = arith.constant 0 : i32
    %c0_i32_0 = arith.constant 0 : i32
    %c0_i32_1 = arith.constant 0 : i32
    return %c0_i32, %c0_i32_0 : i32, i32
  }
  func.func @transform_4(%arg0: i32) -> (i32, i32) {
    %c0_i32 = arith.constant 0 : i32
    %c0_i32_0 = arith.constant 0 : i32
    %c0_i32_1 = arith.constant 0 : i32
    return %c0_i32, %c0_i32_0 : i32, i32
  }
  func.func @transform_5(%arg0: i32) -> (i32, i32) {
    %c0_i32 = arith.constant 0 : i32
    %c0_i32_0 = arith.constant 0 : i32
    return %arg0, %c0_i32 : i32, i32
  }
}

</mosaic_0001>

<bundles_post_ra>
// kernel: image_encoder.1
= control target key start
LH: loop header
LB: loop body
LE: loop exit
PB: predicated region body
PF: predicated region fallthrough
CT: control target
= control target key end

     0   :  { %v2311_v3 = vmov 0.0|0.0   ;;  %vm2312_vm0 = vmmov 0   ;;  %v2313_v14 = vmov 0.0   ;;  %s2996_s0 = inlined_call_operand.vmem [shape: f32[2,128], index: 0, kind: input, shape index: {}]   ;;  %s2997_s1 = inlined_call_operand.vmem [shape: f32[2,128], index: 1, kind: input, shape index: {}]   ;;  %s2998_s2 = inlined_call_operand.vmem [shape: f32[128,128], index: 2, kind: input, shape index: {}]   ;;  %s2999_s3 = inlined_call_operand.vmem [shape: f32[128,128], index: 3, kind: input, shape index: {}]   ;;  %s3000_s4 = inlined_call_operand.vmem [shape: f32[1,128], index: 4, kind: input, shape index: {}]   ;;  %s3001_s5 = inlined_call_operand.hbm [shape: f32[2,128], index: 5, kind: output, shape index: {}]  }
   0x1   :  { %v39_v0 = vld [vmem:[%s2999_s3] sm:$0xff]  ;;  %v40_v1 = vld [vmem:[%s2999_s3 + $0x8] sm:$0xff]  ;;  %v41_v2 = vld [vmem:[%s2999_s3 + $0x10] sm:$0xff]  ;;  %1993 = vmatprep.subr.bf16.mxu0 %v2311_v3  ;;  %2017 = vmatprep.subr.bf16.mxu1 %v2311_v3 }
   0x2   :  { %v56_v4 = vand.u32 4294901760, %v39_v0  ;;  %v59_v5 = vand.u32 4294901760, %v40_v1  ;;  %v42_v6 = vld [vmem:[%s2999_s3 + $0x18] sm:$0xff]  ;;  %v62_v7 = vand.u32 4294901760, %v41_v2  ;;  %v43_v8 = vld [vmem:[%s2999_s3 + $0x20] sm:$0xff]  ;;  %v44_v9 = vld [vmem:[%s2999_s3 + $0x28] sm:$0xff]  ;;  %1605 = vmatprep.mubr.msk.f32.mxu0 %vm2312_vm0, %v2313_v14  ;;  %1640 = vmatprep.mubr.msk.f32.mxu1 %vm2312_vm0, %v2313_v14 }
   0x3   :  { %v65_v10 = vand.u32 4294901760, %v42_v6  ;;  %v68_v11 = vand.u32 4294901760, %v43_v8  ;;  %v71_v12 = vand.u32 4294901760, %v44_v9  ;;  %v45_v13 = vld [vmem:[%s2999_s3 + $0x30] sm:$0xff]  ;;  %v46_v19 = vld [vmem:[%s2999_s3 + $0x38] sm:$0xff]  ;;  %v47_v20 = vld [vmem:[%s2999_s3 + $0x40] sm:$0xff] }
   0x4   :  { %v2372_v15 = vpack.c.bf16 %v59_v5, %v56_v4  ;;  %v2374_v16 = vsub.f32 %v39_v0, %v56_v4  ;;  %v2376_v17 = vsub.f32 %v40_v1, %v59_v5  ;;  %v2378_v18 = vsub.f32 %v41_v2, %v62_v7  ;;  %v48_v27 = vld [vmem:[%s2999_s3 + $0x48] sm:$0xff]  ;;  %v49_v40 = vld [vmem:[%s2999_s3 + $0x50] sm:$0xff]  ;;  %v50_v41 = vld [vmem:[%s2999_s3 + $0x58] sm:$0xff] }
   0x5   :  { %v2386_v21 = vpack.c.bf16 %v65_v10, %v62_v7  ;;  %v2388_v22 = vsub.f32 %v42_v6, %v65_v10  ;;  %v2391_v23 = vsub.f32 %v43_v8, %v68_v11  ;;  %v74_v26 = vand.u32 4294901760, %v45_v13  ;;  %v2437_v50 = vld [vmem:[%s2999_s3 + $0x60] sm:$0xff]  ;;  %v52_v59 = vld [vmem:[%s2999_s3 + $0x68] sm:$0xff] }
   0x6   :  { %1995 = vmatpush3.bf16.msra.mxu0 %v2372_v15  ;;  %v149_v24 = vand.u32 4294901760, %v2374_v16  ;;  %v156_v25 = vand.u32 4294901760, %v2376_v17  ;;  %v77_v28 = vand.u32 4294901760, %v46_v19  ;;  %v163_v29 = vand.u32 4294901760, %v2378_v18 }
   0x7   :  { %1996 = vmatprep.subr.bf16.mxu0 %v2311_v3  ;;  %v170_v30 = vand.u32 4294901760, %v2388_v22  ;;  %v80_v31 = vand.u32 4294901760, %v47_v20  ;;  %v2401_v32 = vsub.f32 %v44_v9, %v71_v12  ;;  %v2409_v35 = vsub.f32 %v45_v13, %v74_v26 }
   0x8   :  { %v150_v33 = vsub.f32 %v2374_v16, %v149_v24  ;;  %v157_v34 = vsub.f32 %v2376_v17, %v156_v25  ;;  %v2411_v36 = vsub.f32 %v46_v19, %v77_v28  ;;  %v164_v37 = vsub.f32 %v2378_v18, %v163_v29 }
   0x9   :  { %v171_v38 = vsub.f32 %v2388_v22, %v170_v30  ;;  %v83_v39 = vand.u32 4294901760, %v48_v27  ;;  %v2426_v42 = vpack.c.bf16 %v71_v12, %v68_v11  ;;  %v2428_v45 = vpack.c.bf16 %v77_v28, %v74_v26 }
   0xa   :  { %1998 = vmatpush3.bf16.msra.mxu0 %v2386_v21  ;;  %v151_v43 = vand.u32 4294901760, %v150_v33  ;;  %v158_v44 = vand.u32 4294901760, %v157_v34  ;;  %v165_v46 = vand.u32 4294901760, %v164_v37  ;;  %v2431_v48 = vsub.f32 %v47_v20, %v80_v31 }
   0xb   :  { %1999 = vmatprep.subr.bf16.mxu0 %v2311_v3  ;;  %v172_v47 = vand.u32 4294901760, %v171_v38  ;;  %v177_v49 = vand.u32 4294901760, %v2391_v23  ;;  %v184_v52 = vand.u32 4294901760, %v2401_v32  ;;  %v86_v53 = vand.u32 4294901760, %v49_v40 }
   0xc   :  { %v2018_v51 = vpack.c.bf16 %v158_v44, %v151_v43  ;;  %v89_v54 = vand.u32 4294901760, %v50_v41  ;;  %v2440_v55 = vsub.f32 %v48_v27, %v83_v39  ;;  %v191_v57 = vand.u32 4294901760, %v2409_v35 }
   0xd   :  { %v178_v56 = vsub.f32 %v2391_v23, %v177_v49  ;;  %v198_v58 = vand.u32 4294901760, %v2411_v36 }
   0xe   :  { %10 = vsyncpa [#allocation3], 0  ;;  %2001 = vmatpush3.bf16.msra.mxu0 %v2426_v42  ;;  %2019 = vmatpush3.bf16.msra.mxu1 %v2018_v51  ;;  %v2021_v60 = vpack.c.bf16 %v172_v47, %v165_v46  ;;  %v2451_v61 = vpack.c.bf16 %v83_v39, %v80_v31  ;;  %v185_v62 = vsub.f32 %v2401_v32, %v184_v52  ;;  %v92_v63 = vand.u32 4294901760, %v2437_v50  ;;  %v53_v0 = vld [vmem:[%s2999_s3 + $0x70] sm:$0xff]  ;;  %v54_v6 = vld [vmem:[%s2999_s3 + $0x78] sm:$0xff]  ;;  %s2314_s7 = smov [#allocation2]  }
   0xf   :  { %2002 = vmatprep.subr.bf16.mxu0 %v2311_v3  ;;  %2020 = vmatprep.subr.bf16.mxu1 %v2311_v3  ;;  %v179_v1 = vand.u32 4294901760, %v178_v56  ;;  %v2462_v2 = vsub.f32 %v49_v40, %v86_v53  ;;  %v192_v4 = vsub.f32 %v2409_v35, %v191_v57  ;;  %v199_v5 = vsub.f32 %v2411_v36, %v198_v58  ;;  %v38_v31 = vld [vmem:[%s2997_s1] sm:$0x3]  ;;  %s1360_s8 = sshll.u32 %s2314_s7, 4  ;;  %s1361_s8 = int_to_ptr.vmem [resolvable:$true] %s1360_s8 }
  0x10   :  { %v186_v7 = vand.u32 4294901760, %v185_v62  ;;  %v2473_v8 = vsub.f32 %v50_v41, %v89_v54  ;;  %v95_v9 = vand.u32 4294901760, %v52_v59  ;;  %v205_v10 = vand.u32 4294901760, %v2431_v48  ;;  %s2287_s9 = scalar_lea.vmem %s1361_s8, 32  ;;  %p2292_p1 = scmp.lt.s32.totalorder %s1361_s8, %s1361_s8 }
  0x11   :  { %v193_v11 = vand.u32 4294901760, %v192_v4  ;;  %v200_v12 = vand.u32 4294901760, %v199_v5  ;;  %v212_v13 = vand.u32 4294901760, %v2440_v55  ;;  %v98_v19 = vand.u32 4294901760, %v53_v0  ;;  %p2288_p0 = scmp.ne.s32.totalorder %s1361_s8, %s2287_s9  ;;  %p2293_p2 = scmp.lt.s32.totalorder %s2287_s9, %s2287_s9 }
  0x12   :  { %2004 = vmatpush3.bf16.msra.mxu0 %v2428_v45  ;;  %2022 = vmatpush3.bf16.msra.mxu1 %v2021_v60  ;;  %v2024_v20 = vpack.c.bf16 %v186_v7, %v179_v1  ;;  %v2479_v26 = vsub.f32 %v2437_v50, %v92_v63  ;;  %v2481_v27 = vsub.f32 %v52_v59, %v95_v9  ;;  %v101_v28 = vand.u32 4294901760, %v54_v6 }
  0x13   :  { %2005 = vmatprep.subr.bf16.mxu0 %v2311_v3  ;;  %2023 = vmatprep.subr.bf16.mxu1 %v2311_v3  ;;  %v206_v33 = vsub.f32 %v2431_v48, %v205_v10  ;;  %v213_v34 = vsub.f32 %v2440_v55, %v212_v13  ;;  %v219_v37 = vand.u32 4294901760, %v2462_v2  ;;  %v2495_v38 = vpack.c.bf16 %v89_v54, %v86_v53  ;;  %p2294_p3 = por %p2293_p2, %p2292_p1 }
  0x14   :  { %v2027_v39 = vpack.c.bf16 %v200_v12, %v193_v11  ;;  %v2497_v40 = vsub.f32 %v53_v0, %v98_v19  ;;  %v226_v41 = vand.u32 4294901760, %v2473_v8  ;;  %v2503_v47 = vand.u32 4294901760, %v38_v31 }
  0x15   :  { %v207_v43 = vand.u32 4294901760, %v206_v33  ;;  %v214_v44 = vand.u32 4294901760, %v213_v34  ;;  %v220_v46 = vsub.f32 %v2462_v2, %v219_v37  ;;  %v2506_v50 = vsub.f32 %v54_v6, %v101_v28  ;;  %p2295_p4 = pnand %p2294_p3, %p2288_p0 }
  0x16   :  { %2007 = vmatpush3.bf16.msra.mxu0 %v2451_v61  ;;  %2025 = vmatpush3.bf16.msra.mxu1 %v2024_v20  ;;  %v227_v51 = vsub.f32 %v2473_v8, %v226_v41  ;;  %v233_v53 = vand.u32 4294901760, %v2479_v26  ;;  %v240_v54 = vand.u32 4294901760, %v2481_v27  ;;  %v2516_v56 = vsub.f32 %v38_v31, %v2503_v47 }
  0x17   :  { %2008 = vmatprep.subr.bf16.mxu0 %v2311_v3  ;;  %2026 = vmatprep.subr.bf16.mxu1 %v2311_v3  ;;  %v2518_v59 = vpack.c.bf16 %v95_v9, %v92_v63  ;;  %v2030_v60 = vpack.c.bf16 %v214_v44, %v207_v43  ;;  %v221_v62 = vand.u32 4294901760, %v220_v46  ;;  %v247_v1 = vand.u32 4294901760, %v2497_v40 }
  0x18   :  { %v138_v0 = vand.u32 4294901760, %v2516_v56  ;;  %v228_v4 = vand.u32 4294901760, %v227_v51  ;;  %v234_v5 = vsub.f32 %v2479_v26, %v233_v53  ;;  %v241_v6 = vsub.f32 %v2481_v27, %v240_v54 }
  0x19   :  { %v254_v63 = vand.u32 4294901760, %v2506_v50  ;;  %v2532_v7 = vpack.c.bf16 %v101_v28, %v98_v19  ;;  %v248_v11 = vsub.f32 %v2497_v40, %v247_v1  ;;  %v2042_v34 = vpack.c.bf16 %v2376_v17, %v2374_v16 }
  0x1a   :  { %2010 = vmatpush3.bf16.msra.mxu0 %v2495_v38  ;;  %2028 = vmatpush3.bf16.msra.mxu1 %v2027_v39  ;;  %v139_v9 = vsub.f32 %v2516_v56, %v138_v0  ;;  %v2033_v12 = vpack.c.bf16 %v228_v4, %v221_v62  ;;  %v235_v20 = vand.u32 4294901760, %v234_v5  ;;  %v242_v31 = vand.u32 4294901760, %v241_v6 }
  0x1b   :  { %2011 = vmatprep.subr.bf16.mxu0 %v2311_v3  ;;  %2029 = vmatprep.subr.bf16.mxu1 %v2311_v3  ;;  %v255_v33 = vsub.f32 %v2506_v50, %v254_v63  ;;  %v249_v39 = vand.u32 4294901760, %v248_v11  ;;  %v2045_v46 = vpack.c.bf16 %v2388_v22, %v2378_v18  ;;  %v2048_v51 = vpack.c.bf16 %v2401_v32, %v2391_v23  ;;  %v22_v18 = vld [vmem:[%s2998_s2] sm:$0xff]  ;;  %v23_v22 = vld [vmem:[%s2998_s2 + $0x8] sm:$0xff] }
  0x1c   :  { %v140_v19 = vand.u32 4294901760, %v139_v9  ;;  %v2036_v28 = vpack.c.bf16 %v242_v31, %v235_v20  ;;  %v2054_v62 = vpack.c.bf16 %v2440_v55, %v2431_v48  ;;  %v2057_v4 = vpack.c.bf16 %v2473_v8, %v2462_v2  ;;  %v26_v48 = vld [vmem:[%s2998_s2 + $0x20] sm:$0xff] }
  0x1d   :  { %v256_v43 = vand.u32 4294901760, %v255_v33  ;;  %v2060_v5 = vpack.c.bf16 %v2481_v27, %v2479_v26  ;;  %v2063_v6 = vpack.c.bf16 %v2506_v50, %v2497_v40  ;;  %v2090_v9 = vpack.c.bf16 %v156_v25, %v149_v24  ;;  %v24_v25 = vld [vmem:[%s2998_s2 + $0x10] sm:$0xff]  ;;  %v2698_v50 = vld [vmem:[%s2998_s2 + $0x40] sm:$0xff] }
  0x1e   :  { %2013 = vmatpush3.bf16.msra.mxu0 %v2518_v59  ;;  %2031 = vmatpush3.bf16.msra.mxu1 %v2030_v60  ;;  %v2051_v60 = vpack.c.bf16 %v2411_v36, %v2409_v35  ;;  %v2093_v11 = vpack.c.bf16 %v170_v30, %v163_v29  ;;  %v2096_v16 = vpack.c.bf16 %v184_v52, %v177_v49  ;;  %v697_v23 = vand.u32 4294901760, %v22_v18  ;;  %v25_v29 = vld [vmem:[%s2998_s2 + $0x18] sm:$0xff] }
  0x1f   :  { %2014 = vmatprep.subr.bf16.mxu0 %v2311_v3  ;;  %2032 = vmatprep.subr.bf16.mxu1 %v2311_v3  ;;  %v2039_v44 = vpack.c.bf16 %v256_v43, %v249_v39  ;;  %v2099_v17 = vpack.c.bf16 %v198_v58, %v191_v57  ;;  %v700_v24 = vand.u32 4294901760, %v23_v22  ;;  %v703_v30 = vand.u32 4294901760, %v24_v25  ;;  %v2674_v57 = vld [vmem:[%s2998_s2 + $0x30] sm:$0xff]  ;;  %v29_v58 = vld [vmem:[%s2998_s2 + $0x38] sm:$0xff] }
  0x20   :  { %v706_v32 = vand.u32 4294901760, %v25_v29  ;;  %v2108_v35 = vpack.c.bf16 %v240_v54, %v233_v53  ;;  %v2655_v36 = vsub.f32 %v22_v18, %v697_v23  ;;  %v709_v55 = vand.u32 4294901760, %v26_v48  ;;  %v32_v43 = vld [vmem:[%s2998_s2 + $0x50] sm:$0xff] }
  0x21   :  { %v2667_v49 = vsub.f32 %v24_v25, %v703_v30  ;;  %v2111_v2 = vpack.c.bf16 %v254_v63, %v247_v1  ;;  %v715_v26 = vand.u32 4294901760, %v2674_v57  ;;  %v718_v27 = vand.u32 4294901760, %v29_v58 }
  0x22   :  { %2016 = vmatpush3.bf16.msra.mxu0 %v2532_v7  ;;  %2034 = vmatpush3.bf16.msra.mxu1 %v2033_v12  ;;  %v2669_v52 = vsub.f32 %v25_v29, %v706_v32  ;;  %v721_v63 = vand.u32 4294901760, %v2698_v50  ;;  %v2721_v12 = vpack.c.bf16 %v706_v32, %v703_v30  ;;  %v36_v32 = vld [vmem:[%s2998_s2 + $0x70] sm:$0xff]  ;;  %vm1346_vm1 = vcmask 1041408  }
  0x23   :  { %2035 = vmatprep.subr.bf16.mxu1 %v2311_v3  ;;  %2041 = vmatprep.subr.bf16.mxu0 %v2311_v3  ;;  %v804_v40 = vand.u32 4294901760, %v2667_v49  ;;  %v2717_v1 = vsub.f32 %v29_v58, %v718_v27  ;;  %v2770_v18 = vpack.c.bf16 %v718_v27, %v715_v26  ;;  %v37_v58 = vld [vmem:[%s2998_s2 + $0x78] sm:$0xff]  ;;  %v739_v27 = vand.u32 4294901760, %v36_v32 }
  0x25   :  { %1606 = vmatmul.mubr.f32.vlgmr.msra.gmra.mrb[0].mxu0 %v140_v19  ;;  %v805_v20 = vsub.f32 %v2667_v49, %v804_v40 }
  0x26   :  { %2037 = vmatpush3.bf16.msra.mxu1 %v2036_v28  ;;  %2043 = vmatpush3.bf16.msra.mxu0 %v2042_v34 }
  0x27   :  { %2038 = vmatprep.subr.bf16.mxu1 %v2311_v3  ;;  %2044 = vmatprep.subr.bf16.mxu0 %v2311_v3 }
  0x28   :  { %1675 = vmatprep.mubr.msk.f32.mxu0 %vm2312_vm0, %v2313_v14 }
  0x2a   :  { %2040 = vmatpush3.bf16.msra.mxu1 %v2039_v44  ;;  %2046 = vmatpush3.bf16.msra.mxu0 %v2045_v46  ;;  %v2744_v46 = vsub.f32 %v2698_v50, %v721_v63 }
  0x2b   :  { %2047 = vmatprep.subr.bf16.mxu0 %v2311_v3  ;;  %2065 = vmatprep.subr.bf16.mxu1 %v2311_v3 }
  0x2c   :  { %v846_v29 = vand.u32 4294901760, %v2744_v46 }
  0x2d   :  { %1641 = vmatmul.mubr.f32.vlgmr.msra.gmra.mrb[0].mxu1 %v2503_v47 }
  0x2e   :  { %2049 = vmatpush3.bf16.msra.mxu0 %v2048_v51  ;;  %2067 = vmatpush3.bf16.msra.mxu1 %v2372_v15  ;;  %v847_v50 = vsub.f32 %v2744_v46, %v846_v29 }
  0x2f   :  { %2050 = vmatprep.subr.bf16.mxu0 %v2311_v3  ;;  %2068 = vmatprep.subr.bf16.mxu1 %v2311_v3 }
  0x30   :  { %1710 = vmatprep.mubr.msk.f32.mxu1 %vm2312_vm0, %v2313_v14 }
  0x32   :  { %2052 = vmatpush3.bf16.msra.mxu0 %v2051_v60  ;;  %2070 = vmatpush3.bf16.msra.mxu1 %v2386_v21  ;;  %v839_v60 = vand.u32 4294901760, %v2717_v1 }
  0x33   :  { %2053 = vmatprep.subr.bf16.mxu0 %v2311_v3  ;;  %2071 = vmatprep.subr.bf16.mxu1 %v2311_v3 }
  0x36   :  { %2055 = vmatpush3.bf16.msra.mxu0 %v2054_v62  ;;  %2073 = vmatpush3.bf16.msra.mxu1 %v2426_v42  ;;  %v806_v62 = vand.u32 4294901760, %v805_v20 }
  0x37   :  { %2056 = vmatprep.subr.bf16.mxu0 %v2311_v3  ;;  %2074 = vmatprep.subr.bf16.mxu1 %v2311_v3 }
  0x3a   :  { %2058 = vmatpush3.bf16.msra.mxu0 %v2057_v4  ;;  %2076 = vmatpush3.bf16.msra.mxu1 %v2428_v45 }
  0x3b   :  { %2059 = vmatprep.subr.bf16.mxu0 %v2311_v3  ;;  %2077 = vmatprep.subr.bf16.mxu1 %v2311_v3 }
  0x3e   :  { %2061 = vmatpush3.bf16.msra.mxu0 %v2060_v5  ;;  %2079 = vmatpush3.bf16.msra.mxu1 %v2451_v61 }
  0x3f   :  { %2062 = vmatprep.subr.bf16.mxu0 %v2311_v3  ;;  %2080 = vmatprep.subr.bf16.mxu1 %v2311_v3 }
  0x42   :  { %2064 = vmatpush3.bf16.msra.mxu0 %v2063_v6  ;;  %2082 = vmatpush3.bf16.msra.mxu1 %v2495_v38  ;;  %v727_v6 = vand.u32 4294901760, %v32_v43 }
  0x43   :  { %2083 = vmatprep.subr.bf16.mxu1 %v2311_v3  ;;  %2089 = vmatprep.subr.bf16.mxu0 %v2311_v3 }
  0x44   :  { %v2780_v25 = vsub.f32 %v32_v43, %v727_v6  ;;  %v2822_v43 = vsub.f32 %v36_v32, %v739_v27 }
  0x45   :  { %1676 = vmatmul.mubr.f32.vlgmr.msra.gmra.mrb[2].mxu0 %v2516_v56 }
  0x46   :  { %2085 = vmatpush3.bf16.msra.mxu1 %v2518_v59  ;;  %2091 = vmatpush3.bf16.msra.mxu0 %v2090_v9  ;;  %v2755_v9 = vld [vmem:[%s2998_s2 + $0x60] sm:$0xff] }
  0x47   :  { %2086 = vmatprep.subr.bf16.mxu1 %v2311_v3  ;;  %2092 = vmatprep.subr.bf16.mxu0 %v2311_v3 }
  0x48   :  { %1745 = vmatprep.mubr.msk.f32.mxu0 %vm2312_vm0, %v2313_v14 }
  0x4a   :  { %2088 = vmatpush3.bf16.msra.mxu1 %v2532_v7  ;;  %2094 = vmatpush3.bf16.msra.mxu0 %v2093_v11 }
  0x4b   :  { %2095 = vmatprep.subr.bf16.mxu0 %v2311_v3  ;;  %2113 = vmatprep.subr.bf16.mxu1 %v2311_v3 }
  0x4d   :  { %1711 = vmatmul.mubr.f32.vlgmr.msra.gmra.mrb[2].mxu1 %v138_v0  ;;  %v31_v0 = vld [vmem:[%s2998_s2 + $0x48] sm:$0xff] }
  0x4e   :  { %2097 = vmatpush3.bf16.msra.mxu0 %v2096_v16  ;;  %2115 = vmatpush3.bf16.msra.mxu1 %v2372_v15  ;;  %v2102_v15 = vpack.c.bf16 %v212_v13, %v205_v10  ;;  %v790_v10 = vand.u32 4294901760, %v2655_v36  ;;  %v724_v33 = vand.u32 4294901760, %v31_v0 }
  0x4f   :  { %2098 = vmatprep.subr.bf16.mxu0 %v2311_v3  ;;  %2116 = vmatprep.subr.bf16.mxu1 %v2311_v3 }
  0x50   :  { %1780 = vmatprep.mubr.msk.f32.mxu1 %vm2312_vm0, %v2313_v14  ;;  %v791_v54 = vsub.f32 %v2655_v36, %v790_v10  ;;  %v2750_v5 = vsub.f32 %v31_v0, %v724_v33 }
  0x52   :  { %2100 = vmatpush3.bf16.msra.mxu0 %v2099_v17  ;;  %2118 = vmatpush3.bf16.msra.mxu1 %v2386_v21  ;;  %v2105_v21 = vpack.c.bf16 %v226_v41, %v219_v37  ;;  %v2689_v37 = vpack.c.bf16 %v700_v24, %v697_v23  ;;  %v811_v41 = vand.u32 4294901760, %v2669_v52  ;;  %v792_v19 = vand.u32 4294901760, %v791_v54 }
  0x53   :  { %2101 = vmatprep.subr.bf16.mxu0 %v2311_v3  ;;  %2119 = vmatprep.subr.bf16.mxu1 %v2311_v3  ;;  %v733_v23 = vand.u32 4294901760, %v2755_v9  ;;  %v853_v30 = vand.u32 4294901760, %v2750_v5 }
  0x54   :  { %v812_v31 = vsub.f32 %v2669_v52, %v811_v41 }
  0x55   :  { %v854_v54 = vsub.f32 %v2750_v5, %v853_v30 }
  0x56   :  { %2103 = vmatpush3.bf16.msra.mxu0 %v2102_v15  ;;  %2121 = vmatpush3.bf16.msra.mxu1 %v2426_v42  ;;  %v2657_v42 = vsub.f32 %v23_v22, %v700_v24  ;;  %v813_v4 = vand.u32 4294901760, %v812_v31  ;;  %v742_v31 = vand.u32 4294901760, %v37_v58 }
  0x57   :  { %2104 = vmatprep.subr.bf16.mxu0 %v2311_v3  ;;  %2122 = vmatprep.subr.bf16.mxu1 %v2311_v3 }
  0x58   :  { %v797_v13 = vand.u32 4294901760, %v2657_v42  ;;  %v2165_v24 = vpack.c.bf16 %v813_v4, %v806_v62  ;;  %v855_v62 = vand.u32 4294901760, %v854_v54 }
  0x5a   :  { %2106 = vmatpush3.bf16.msra.mxu0 %v2105_v21  ;;  %2124 = vmatpush3.bf16.msra.mxu1 %v2428_v45  ;;  %v27_v45 = vld [vmem:[%s2998_s2 + $0x28] sm:$0xff]  ;;  %v798_v56 = vsub.f32 %v2657_v42, %v797_v13  ;;  %v840_v21 = vsub.f32 %v2717_v1, %v839_v60 }
  0x5b   :  { %2107 = vmatprep.subr.bf16.mxu0 %v2311_v3  ;;  %2125 = vmatprep.subr.bf16.mxu1 %v2311_v3  ;;  %v712_v8 = vand.u32 4294901760, %v27_v45 }
  0x5c   :  { %v799_v28 = vand.u32 4294901760, %v798_v56  ;;  %v860_v56 = vand.u32 4294901760, %v2780_v25 }
  0x5d   :  { %v2701_v53 = vsub.f32 %v27_v45, %v712_v8  ;;  %v2741_v44 = vpack.c.bf16 %v712_v8, %v709_v55  ;;  %v841_v8 = vand.u32 4294901760, %v840_v21 }
  0x5e   :  { %2109 = vmatpush3.bf16.msra.mxu0 %v2108_v35  ;;  %2127 = vmatpush3.bf16.msra.mxu1 %v2451_v61  ;;  %v2691_v61 = vsub.f32 %v26_v48, %v709_v55  ;;  %v2162_v11 = vpack.c.bf16 %v799_v28, %v792_v19  ;;  %v861_v4 = vsub.f32 %v2780_v25, %v860_v56 }
  0x5f   :  { %2110 = vmatprep.subr.bf16.mxu0 %v2311_v3  ;;  %2128 = vmatprep.subr.bf16.mxu1 %v2311_v3  ;;  %v825_v39 = vand.u32 4294901760, %v2701_v53 }
  0x60   :  { %v818_v34 = vand.u32 4294901760, %v2691_v61 }
  0x61   :  { %v826_v17 = vsub.f32 %v2701_v53, %v825_v39 }
  0x62   :  { %2112 = vmatpush3.bf16.msra.mxu0 %v2111_v2  ;;  %2130 = vmatpush3.bf16.msra.mxu1 %v2495_v38  ;;  %v2715_v38 = vsub.f32 %v2674_v57, %v715_v26  ;;  %v819_v16 = vsub.f32 %v2691_v61, %v818_v34  ;;  %v2795_v57 = vpack.c.bf16 %v724_v33, %v721_v63 }
  0x63   :  { %2131 = vmatprep.subr.bf16.mxu1 %v2311_v3  ;;  %2137 = vmatprep.subr.bf16.mxu0 %v2311_v3  ;;  %v827_v48 = vand.u32 4294901760, %v826_v17  ;;  %v2801_v26 = vsub.f32 %v2755_v9, %v733_v23 }
  0x64   :  { %v832_v51 = vand.u32 4294901760, %v2715_v38  ;;  %v820_v35 = vand.u32 4294901760, %v819_v16 }
  0x65   :  { %1746 = vmatmul.mubr.f32.vlgmr.msra.gmra.mrb[4].mxu0 %v2503_v47  ;;  %v874_v16 = vand.u32 4294901760, %v2801_v26 }
  0x66   :  { %2133 = vmatpush3.bf16.msra.mxu1 %v2518_v59  ;;  %2139 = vmatpush3.bf16.msra.mxu0 %v2689_v37  ;;  %v33_v59 = vld [vmem:[%s2998_s2 + $0x58] sm:$0xff]  ;;  %v833_v22 = vsub.f32 %v2715_v38, %v832_v51  ;;  %v2168_v63 = vpack.c.bf16 %v827_v48, %v820_v35 }
  0x67   :  { %2134 = vmatprep.subr.bf16.mxu1 %v2311_v3  ;;  %2140 = vmatprep.subr.bf16.mxu0 %v2311_v3  ;;  %v730_v15 = vand.u32 4294901760, %v33_v59  ;;  %v875_v35 = vsub.f32 %v2801_v26, %v874_v16 }
  0x68   :  { %1815 = vmatprep.mubr.msk.f32.mxu0 %vm2312_vm0, %v2313_v14  ;;  %v834_v2 = vand.u32 4294901760, %v833_v22  ;;  %v862_v22 = vand.u32 4294901760, %v861_v4  ;;  %v2189_v4 = vpack.c.bf16 %v2669_v52, %v2667_v49  ;;  %v2246_v49 = vpack.c.bf16 %v853_v30, %v846_v29 }
  0x69   :  { %v2788_v45 = vsub.f32 %v33_v59, %v730_v15  ;;  %v2820_v19 = vpack.c.bf16 %v730_v15, %v727_v6  ;;  %v848_v59 = vand.u32 4294901760, %v847_v50 }
  0x6a   :  { %2136 = vmatpush3.bf16.msra.mxu1 %v2532_v7  ;;  %2142 = vmatpush3.bf16.msra.mxu0 %v2721_v12  ;;  %v35_v7 = vld [vmem:[%s2998_s2 + $0x68] sm:$0xff]  ;;  %v2171_v28 = vpack.c.bf16 %v841_v8, %v834_v2  ;;  %v876_v8 = vand.u32 4294901760, %v875_v35 }
  0x6b   :  { %2143 = vmatprep.subr.bf16.mxu0 %v2311_v3  ;;  %2161 = vmatprep.subr.bf16.mxu1 %v2311_v3  ;;  %v736_v55 = vand.u32 4294901760, %v35_v7  ;;  %v867_v33 = vand.u32 4294901760, %v2788_v45 }
  0x6d   :  { %1781 = vmatmul.mubr.f32.vlgmr.msra.gmra.mrb[4].mxu1 %v2503_v47  ;;  %v21_v47 = vld [vmem:[%s2996_s0] sm:$0x3]  ;;  %v2815_v20 = vsub.f32 %v35_v7, %v736_v55  ;;  %v868_v6 = vsub.f32 %v2788_v45, %v867_v33  ;;  %v2840_v15 = vpack.c.bf16 %v736_v55, %v733_v23  ;;  %v2174_v7 = vpack.c.bf16 %v855_v62, %v848_v59 }
  0x6e   :  { %2145 = vmatpush3.bf16.msra.mxu0 %v2741_v44  ;;  %2163 = vmatpush3.bf16.msra.mxu1 %v2162_v11  ;;  %v2812_v0 = vand.u32 4294901760, %v21_v47  ;;  %v2831_v11 = vsub.f32 %v37_v58, %v742_v31  ;;  %v2854_v55 = vpack.c.bf16 %v742_v31, %v739_v27  ;;  %v2186_v31 = vpack.c.bf16 %v2657_v42, %v2655_v36 }
  0x6f   :  { %2146 = vmatprep.subr.bf16.mxu0 %v2311_v3  ;;  %2164 = vmatprep.subr.bf16.mxu1 %v2311_v3  ;;  %v881_v17 = vand.u32 4294901760, %v2815_v20  ;;  %v869_v32 = vand.u32 4294901760, %v868_v6  ;;  %v2192_v6 = vpack.c.bf16 %v2701_v53, %v2691_v61  ;;  %v2204_v35 = vpack.c.bf16 %v2815_v20, %v2801_v26 }
  0x70   :  { %1850 = vmatprep.mubr.msk.f32.mxu1 %vm2312_vm0, %v2313_v14  ;;  %v2828_v9 = vsub.f32 %v21_v47, %v2812_v0  ;;  %v895_v23 = vand.u32 4294901760, %v2831_v11  ;;  %v2240_v36 = vpack.c.bf16 %v825_v39, %v818_v34  ;;  %v2243_v42 = vpack.c.bf16 %v839_v60, %v832_v51 }
  0x71   :  { %v882_v48 = vsub.f32 %v2815_v20, %v881_v17  ;;  %v2177_v2 = vpack.c.bf16 %v869_v32, %v862_v22  ;;  %v2198_v22 = vpack.c.bf16 %v2750_v5, %v2744_v46  ;;  %v2201_v32 = vpack.c.bf16 %v2788_v45, %v2780_v25 }
  0x72   :  { %2148 = vmatpush3.bf16.msra.mxu0 %v2770_v18  ;;  %2166 = vmatpush3.bf16.msra.mxu1 %v2165_v24  ;;  %v779_v21 = vand.u32 4294901760, %v2828_v9  ;;  %v888_v24 = vand.u32 4294901760, %v2822_v43  ;;  %v896_v54 = vsub.f32 %v2831_v11, %v895_v23  ;;  %v2252_v52 = vpack.c.bf16 %v881_v17, %v874_v16  ;;  %v1368_v17 = vld [vmem:[%s3000_s4] ss:$0 sm:$0xff] }
  0x73   :  { %2149 = vmatprep.subr.bf16.mxu0 %v2311_v3  ;;  %2167 = vmatprep.subr.bf16.mxu1 %v2311_v3  ;;  %v883_v50 = vand.u32 4294901760, %v882_v48  ;;  %v2207_v48 = vpack.c.bf16 %v2831_v11, %v2822_v43 }
  0x74   :  { %v780_v47 = vsub.f32 %v2828_v9, %v779_v21  ;;  %v889_v58 = vsub.f32 %v2822_v43, %v888_v24  ;;  %v897_v59 = vand.u32 4294901760, %v896_v54 }
  0x76   :  { %2151 = vmatpush3.bf16.msra.mxu0 %v2795_v57  ;;  %2169 = vmatpush3.bf16.msra.mxu1 %v2168_v63  ;;  %v781_v27 = vand.u32 4294901760, %v780_v47  ;;  %v2180_v63 = vpack.c.bf16 %v883_v50, %v876_v8  ;;  %v2234_v47 = vpack.c.bf16 %v797_v13, %v790_v10  ;;  %v2255_v10 = vpack.c.bf16 %v895_v23, %v888_v24 }
  0x77   :  { %2152 = vmatprep.subr.bf16.mxu0 %v2311_v3  ;;  %2170 = vmatprep.subr.bf16.mxu1 %v2311_v3 }
  0x7a   :  { %2154 = vmatpush3.bf16.msra.mxu0 %v2820_v19  ;;  %2172 = vmatpush3.bf16.msra.mxu1 %v2171_v28  ;;  %v890_v28 = vand.u32 4294901760, %v889_v58  ;;  %v2237_v58 = vpack.c.bf16 %v811_v41, %v804_v40 }
  0x7b   :  { %2155 = vmatprep.subr.bf16.mxu0 %v2311_v3  ;;  %2173 = vmatprep.subr.bf16.mxu1 %v2311_v3 }
  0x7c   :  { %v2183_v62 = vpack.c.bf16 %v897_v59, %v890_v28 }
  0x7e   :  { %2157 = vmatpush3.bf16.msra.mxu0 %v2840_v15  ;;  %2175 = vmatpush3.bf16.msra.mxu1 %v2174_v7  ;;  %v2195_v7 = vpack.c.bf16 %v2717_v1, %v2715_v38 }
  0x7f   :  { %2158 = vmatprep.subr.bf16.mxu0 %v2311_v3  ;;  %2176 = vmatprep.subr.bf16.mxu1 %v2311_v3 }
  0x82   :  { %2160 = vmatpush3.bf16.msra.mxu0 %v2854_v55  ;;  %2178 = vmatpush3.bf16.msra.mxu1 %v2177_v2 }
  0x83   :  { %2179 = vmatprep.subr.bf16.mxu1 %v2311_v3  ;;  %2185 = vmatprep.subr.bf16.mxu0 %v2311_v3 }
  0x85   :  { %1816 = vmatmul.mubr.f32.vlgmr.msra.gmra.mrb[6].mxu0 %v781_v27 }
  0x86   :  { %2181 = vmatpush3.bf16.msra.mxu1 %v2180_v63  ;;  %2187 = vmatpush3.bf16.msra.mxu0 %v2186_v31 }
  0x87   :  { %2182 = vmatprep.subr.bf16.mxu1 %v2311_v3  ;;  %2188 = vmatprep.subr.bf16.mxu0 %v2311_v3 }
  0x88   :  { %1885 = vmatprep.mubr.msk.f32.mxu0 %vm2312_vm0, %v2313_v14 }
  0x8a   :  { %2184 = vmatpush3.bf16.msra.mxu1 %v2183_v62  ;;  %2190 = vmatpush3.bf16.msra.mxu0 %v2189_v4 }
  0x8b   :  { %2191 = vmatprep.subr.bf16.mxu0 %v2311_v3  ;;  %2209 = vmatprep.subr.bf16.mxu1 %v2311_v3 }
  0x8d   :  { %1851 = vmatmul.mubr.f32.vlgmr.msra.gmra.mrb[6].mxu1 %v2812_v0 }
  0x8e   :  { %2193 = vmatpush3.bf16.msra.mxu0 %v2192_v6  ;;  %2211 = vmatpush3.bf16.msra.mxu1 %v2689_v37 }
  0x8f   :  { %2194 = vmatprep.subr.bf16.mxu0 %v2311_v3  ;;  %2212 = vmatprep.subr.bf16.mxu1 %v2311_v3 }
  0x90   :  { %1920 = vmatprep.mubr.msk.f32.mxu1 %vm2312_vm0, %v2313_v14 }
  0x92   :  { %2196 = vmatpush3.bf16.msra.mxu0 %v2195_v7  ;;  %2214 = vmatpush3.bf16.msra.mxu1 %v2721_v12 }
  0x93   :  { %2197 = vmatprep.subr.bf16.mxu0 %v2311_v3  ;;  %2215 = vmatprep.subr.bf16.mxu1 %v2311_v3 }
  0x96   :  { %2199 = vmatpush3.bf16.msra.mxu0 %v2198_v22  ;;  %2217 = vmatpush3.bf16.msra.mxu1 %v2741_v44 }
  0x97   :  { %2200 = vmatprep.subr.bf16.mxu0 %v2311_v3  ;;  %2218 = vmatprep.subr.bf16.mxu1 %v2311_v3 }
  0x9a   :  { %2202 = vmatpush3.bf16.msra.mxu0 %v2201_v32  ;;  %2220 = vmatpush3.bf16.msra.mxu1 %v2770_v18 }
  0x9b   :  { %2203 = vmatprep.subr.bf16.mxu0 %v2311_v3  ;;  %2221 = vmatprep.subr.bf16.mxu1 %v2311_v3 }
  0x9e   :  { %2205 = vmatpush3.bf16.msra.mxu0 %v2204_v35  ;;  %2223 = vmatpush3.bf16.msra.mxu1 %v2795_v57 }
  0x9f   :  { %2206 = vmatprep.subr.bf16.mxu0 %v2311_v3  ;;  %2224 = vmatprep.subr.bf16.mxu1 %v2311_v3 }
  0xa2   :  { %2208 = vmatpush3.bf16.msra.mxu0 %v2207_v48  ;;  %2226 = vmatpush3.bf16.msra.mxu1 %v2820_v19 }
  0xa3   :  { %2227 = vmatprep.subr.bf16.mxu1 %v2311_v3  ;;  %2233 = vmatprep.subr.bf16.mxu0 %v2311_v3 }
  0xa5   :  { %1886 = vmatmul.mubr.f32.vlgmr.msra.gmra.mrb[8].mxu0 %v2828_v9 }
  0xa6   :  { %2229 = vmatpush3.bf16.msra.mxu1 %v2840_v15  ;;  %2235 = vmatpush3.bf16.msra.mxu0 %v2234_v47 }
  0xa7   :  { %2230 = vmatprep.subr.bf16.mxu1 %v2311_v3  ;;  %2236 = vmatprep.subr.bf16.mxu0 %v2311_v3 }
  0xa8   :  { %1955 = vmatprep.mubr.msk.f32.mxu0 %vm2312_vm0, %v2313_v14 }
  0xaa   :  { %2232 = vmatpush3.bf16.msra.mxu1 %v2854_v55  ;;  %2238 = vmatpush3.bf16.msra.mxu0 %v2237_v58 }
  0xab   :  { %2239 = vmatprep.subr.bf16.mxu0 %v2311_v3  ;;  %2257 = vmatprep.subr.bf16.mxu1 %v2311_v3 }
  0xad   :  { %1921 = vmatmul.mubr.f32.vlgmr.msra.gmra.mrb[8].mxu1 %v779_v21 }
  0xae   :  { %2241 = vmatpush3.bf16.msra.mxu0 %v2240_v36  ;;  %2259 = vmatpush3.bf16.msra.mxu1 %v2689_v37 }
  0xaf   :  { %2242 = vmatprep.subr.bf16.mxu0 %v2311_v3  ;;  %2260 = vmatprep.subr.bf16.mxu1 %v2311_v3 }
  0xb0   :  { %1990 = vmatprep.mubr.msk.f32.mxu1 %vm2312_vm0, %v2313_v14  ;;  %v2249_v14 = vpack.c.bf16 %v867_v33, %v860_v56 }
  0xb2   :  { %2244 = vmatpush3.bf16.msra.mxu0 %v2243_v42  ;;  %2262 = vmatpush3.bf16.msra.mxu1 %v2721_v12 }
  0xb3   :  { %2245 = vmatprep.subr.bf16.mxu0 %v2311_v3  ;;  %2263 = vmatprep.subr.bf16.mxu1 %v2311_v3 }
  0xb6   :  { %2247 = vmatpush3.bf16.msra.mxu0 %v2246_v49  ;;  %2265 = vmatpush3.bf16.msra.mxu1 %v2741_v44 }
  0xb7   :  { %2248 = vmatprep.subr.bf16.mxu0 %v2311_v3  ;;  %2266 = vmatprep.subr.bf16.mxu1 %v2311_v3 }
  0xba   :  { %2250 = vmatpush3.bf16.msra.mxu0 %v2249_v14  ;;  %2268 = vmatpush3.bf16.msra.mxu1 %v2770_v18 }
  0xbb   :  { %2251 = vmatprep.subr.bf16.mxu0 %v2311_v3  ;;  %2269 = vmatprep.subr.bf16.mxu1 %v2311_v3 }
  0xbe   :  { %2253 = vmatpush3.bf16.msra.mxu0 %v2252_v52  ;;  %2271 = vmatpush3.bf16.msra.mxu1 %v2795_v57 }
  0xbf   :  { %2254 = vmatprep.subr.bf16.mxu0 %v2311_v3  ;;  %2272 = vmatprep.subr.bf16.mxu1 %v2311_v3 }
  0xc2   :  { %2256 = vmatpush3.bf16.msra.mxu0 %v2255_v10  ;;  %2274 = vmatpush3.bf16.msra.mxu1 %v2820_v19 }
  0xc3   :  { %2275 = vmatprep.subr.bf16.mxu1 %v2311_v3 }
  0xc5   :  { %1956 = vmatmul.mubr.f32.vlgmr.msra.gmra.mrb[10].mxu0 %v2812_v0 }
  0xc6   :  { %2277 = vmatpush3.bf16.msra.mxu1 %v2840_v15 }
  0xc7   :  { %2278 = vmatprep.subr.bf16.mxu1 %v2311_v3 }
  0xca   :  { %2280 = vmatpush3.bf16.msra.mxu1 %v2854_v55 }
  0xcd   :  { %1991 = vmatmul.mubr.f32.vlgmr.msra.gmra.mrb[10].mxu1 %v2812_v0 }
  0xf8   :  { %v142_v13 = vpop.f32.mrb[0].mxu0 }
  0xf9   :  { %v1607_v37 = vpop.f32.mrb[1].mxu0 }
 0x100   :  { %v293_v61 = vpop.f32.mrb[0].mxu1 }
 0x101   :  { %v294_v40 = vadd.f32 %v293_v61, %v142_v13  ;;  %v1642_v41 = vpop.f32.mrb[1].mxu1 }
 0x118   :  { %v397_v53 = vpop.f32.mrb[2].mxu0 }
 0x119   :  { %v398_v38 = vadd.f32 %v397_v53, %v294_v40  ;;  %v1677_v1 = vpop.f32.mrb[3].mxu0 }
 0x120   :  { %v486_v12 = vpop.f32.mrb[2].mxu1 }
 0x121   :  { %v487_v34 = vadd.f32 %v486_v12, %v398_v38  ;;  %v1712_v39 = vpop.f32.mrb[3].mxu1 }
 0x138   :  { %v605_v44 = vpop.f32.mrb[4].mxu0 }
 0x139   :  { %v606_v46 = vadd.f32 %v605_v44, %v487_v34  ;;  %v1747_v51 = vpop.f32.mrb[5].mxu0 }
 0x140   :  { %v692_v60 = vpop.f32.mrb[4].mxu1 }
 0x141   :  { %v693_v3 = vadd.f32 %v692_v60, %v606_v46  ;;  %v1782_v5 = vpop.f32.mrb[5].mxu1 }
 0x158   :  { %v783_v18 = vpop.f32.mrb[6].mxu0 }
 0x159   :  { %v784_v25 = vadd.f32 %v783_v18, %v693_v3  ;;  %v1817_v29 = vpop.f32.mrb[7].mxu0 }
 0x160   :  { %v934_v30 = vpop.f32.mrb[6].mxu1 }
 0x161   :  { %v935_v45 = vadd.f32 %v934_v30, %v784_v25  ;;  %v1852_v57 = vpop.f32.mrb[7].mxu1 }
 0x178   :  { %v1038_v26 = vpop.f32.mrb[8].mxu0 }
 0x179   :  { %v1039_v56 = vadd.f32 %v1038_v26, %v935_v45  ;;  %v1887_v0 = vpop.f32.mrb[9].mxu0 }
 0x180   :  { %v1127_v20 = vpop.f32.mrb[8].mxu1 }
 0x181   :  { %v1128_v33 = vadd.f32 %v1127_v20, %v1039_v56  ;;  %v1922_v19 = vpop.f32.mrb[9].mxu1 }
 0x198   :  { %v1246_v43 = vpop.f32.mrb[10].mxu0 }
 0x199   :  { %v1247_v9 = vadd.f32 %v1246_v43, %v1128_v33  ;;  %v1957_v11 = vpop.f32.mrb[11].mxu0 }
 0x1a0   :  { %v1333_v16 = vpop.f32.mrb[10].mxu1 }
 0x1a1   :  { %v1334_v15 = vadd.f32 %v1333_v16, %v1247_v9  ;;  %v1992_v21 = vpop.f32.mrb[11].mxu1 }
 0x1a3   :  { %v1344_v24 = vadd.f32 %v1368_v17, %v1334_v15 }
 0x1a5   :  { %v1345_v23 = vmul.f32 %v1344_v24, %v1344_v24 }
 0x1a7   :  { %v1347_v55 = vsel %vm1346_vm1, %v1345_v23, 0.0 }
 0x1a8   :  { %1348 = vadd.xlane.f32.xlu0 %v1347_v55 }
 0x235   :  { %v1349_v2 = vpop.xlane.xlu0 %1348 }
 0x236   :  { %v1350_v8 = vmax.f32 %v1349_v2, 1e-24 }
 0x238   :  { %2285 = vrsqrt.f32 %v1350_v8 }
 0x242   :  { %v2286_v50 = vpop.eup %2285 }
 0x243   :  { %v1352_v54 = vmul.f32 %v2286_v50, %v1344_v24 }
 0x245   :  { %1353 = vst [vmem:[#allocation2] sm:$0x3] %v1352_v54 }
 0x246   :  { %2298 = shalt.err (!%p2295_p4)
}
 0x247   :  { %s2299_s11 = scalar_lea.hbm %s3001_s5, 32 }
 0x248   :  { %p2300_p5 = scmp.ne.s32.totalorder %s3001_s5, %s2299_s11  ;;  %p2303_p6 = scmp.lt.u32.totalorder %s2299_s11, %s3001_s5 }
 0x24a   :  { %p2305_p7 = pnand %p2303_p6, %p2300_p5 }
 0x24c   :  { %2308 = shalt.err (!%p2305_p7)
}
 0x24d   :  { %1363 = dma.vmem_to_hbm [thread:$0]  %s1361_s8, 32, %s3001_s5, [#allocation3]  }
 0x24e   :  { %2309 = dma.done.wait [#allocation3], 32  }
 0x24f   :  { %2310 = vsyncadd [#allocation3], 4294967264 }
 0x250   :  { %1367 = vsyncpa [#allocation3], 1 }

</bundles_post_ra>
